<compile_context>
chip_gen: v6e
topology: v6e:2x2x1
jax: 0.10.0
libtpu: 0.0.40
codegen_flags: <defaults>
</compile_context>

<pallas_src>
import jax
import jax.numpy as jnp
from jax.experimental import pallas as pl
from jax.experimental.pallas import tpu as pltpu


def _round_up(n, m):
    return ((n + m - 1) // m) * m


def classical_model_kernel(x_ref, win_ref, w1_ref, b1_ref, w2_ref, b2_ref,
                           wout_ref, o_ref):
    # Input projection. win_ref is already (Cp, Hp) = W_in.T (pre-transposed,
    # zero-padded) -> plain lane-axis contraction on the MXU.
    h = jnp.dot(x_ref[...], win_ref[...], preferred_element_type=jnp.float32)
    # dropout(p=0.0) is the identity -> omitted.

    num_layers = w1_ref.shape[0]  # small static Python int -> unrolled
    for l in range(num_layers):
        w1 = w1_ref[l]            # (Hp, Hp), already W1[l].T
        b1 = b1_ref[l]            # (1, Hp)
        w2 = w2_ref[l]            # (Hp, Hp), already W2[l].T
        b2 = b2_ref[l]            # (1, Hp)
        y = jnp.dot(h, w1, preferred_element_type=jnp.float32) + b1
        y = jnp.maximum(y, 0.0)
        y = jnp.dot(y, w2, preferred_element_type=jnp.float32) + b2
        h = jnp.maximum(y + h, 0.0)   # residual + relu

    # Output projection: forward uses output_contexts[0].t() as the F.linear
    # weight, i.e. out = h @ W_out. wout_ref is (Hp, Cop): no transpose.
    # Cop is a multiple of 128 -> unmasked, lane-dense stores.
    o_ref[...] = jnp.dot(h, wout_ref[...], preferred_element_type=jnp.float32)


def classical_model_pallas(x, w_in, w1, b1, w2, b2, w_out):
    """x:(B,C), w_in:(H,C), w1/w2:(L,H,H), b1/b2:(L,1,H), w_out:(H,Co)."""
    B, C = x.shape
    H = w_in.shape[0]
    Co = w_out.shape[1]
    L = w1.shape[0]

    # Pad feature dims to the 128-lane quantum; pad batch to the tile size.
    Cp = _round_up(C, 128)
    Hp = _round_up(H, 128)
    Cop = _round_up(Co, 128)
    tile_m = 128 if B >= 128 else _round_up(B, 8)
    Bp = _round_up(B, tile_m)

    f32 = jnp.float32
    x_p = jnp.zeros((Bp, Cp), f32).at[:B, :C].set(x.astype(f32))
    w_in_t = jnp.zeros((Cp, Hp), f32).at[:C, :H].set(w_in.astype(f32).T)
    w1_t = jnp.zeros((L, Hp, Hp), f32).at[:, :H, :H].set(
        jnp.swapaxes(w1.astype(f32), 1, 2))
    b1_p = jnp.zeros((L, 1, Hp), f32).at[:, :, :H].set(b1.astype(f32))
    w2_t = jnp.zeros((L, Hp, Hp), f32).at[:, :H, :H].set(
        jnp.swapaxes(w2.astype(f32), 1, 2))
    b2_p = jnp.zeros((L, 1, Hp), f32).at[:, :, :H].set(b2.astype(f32))
    w_out_p = jnp.zeros((Hp, Cop), f32).at[:H, :Co].set(w_out.astype(f32))

    grid = (Bp // tile_m,)
    out_padded = pl.pallas_call(
        classical_model_kernel,
        out_shape=jax.ShapeDtypeStruct((Bp, Cop), jnp.float32),
        grid=grid,
        in_specs=[
            pl.BlockSpec((tile_m, Cp), lambda i: (i, 0)),     # activations: batch-tiled
            pl.BlockSpec((Cp, Hp), lambda i: (0, 0)),         # weights: VMEM-resident
            pl.BlockSpec((L, Hp, Hp), lambda i: (0, 0, 0)),
            pl.BlockSpec((L, 1, Hp), lambda i: (0, 0, 0)),
            pl.BlockSpec((L, Hp, Hp), lambda i: (0, 0, 0)),
            pl.BlockSpec((L, 1, Hp), lambda i: (0, 0, 0)),
            pl.BlockSpec((Hp, Cop), lambda i: (0, 0)),
        ],
        out_specs=pl.BlockSpec((tile_m, Cop), lambda i: (i, 0)),
        compiler_params=pltpu.CompilerParams(
            dimension_semantics=("parallel",)),
    )(x_p, w_in_t, w1_t, b1_p, w2_t, b2_p, w_out_p)

    # Slice the lane/batch padding back off.
    return out_padded[:B, :Co]


def classical_model_ref(x, w_in, w1, b1, w2, b2, w_out):
    h = x @ w_in.T
    for l in range(w1.shape[0]):
        y = jnp.maximum(h @ w1[l].T + b1[l], 0.0)
        y = y @ w2[l].T + b2[l]
        h = jnp.maximum(y + h, 0.0)
    return h @ w_out


if __name__ == "__main__":
    # Small shapes consistent with the module's forward.
    batch = 8
    context_size = 16      # in_features of the input projection
    hidden_size = 32
    num_core_layers = 2
    out_context = 16       # columns of output_contexts[0]

    key = jax.random.PRNGKey(0)
    k = jax.random.split(key, 8)

    # input_batch: (B, context_size)
    x = jax.random.normal(k[0], (batch, context_size), dtype=jnp.float32)
    # input_contexts[0]: (hidden_size, context_size)  (F.linear weight layout)
    w_in = jax.random.normal(k[1], (hidden_size, context_size), jnp.float32) * 0.1
    # ClassicResBlock parameters, stacked over layers.
    w1 = jax.random.normal(k[2], (num_core_layers, hidden_size, hidden_size),
                           jnp.float32) * 0.1
    b1 = jax.random.normal(k[3], (num_core_layers, 1, hidden_size),
                           jnp.float32) * 0.1
    w2 = jax.random.normal(k[4], (num_core_layers, hidden_size, hidden_size),
                           jnp.float32) * 0.1
    b2 = jax.random.normal(k[5], (num_core_layers, 1, hidden_size),
                           jnp.float32) * 0.1
    # output_contexts[0]: (hidden_size, out_context); forward uses its transpose
    # as an F.linear weight, i.e. out = h @ output_contexts[0].
    w_out = jax.random.normal(k[6], (hidden_size, out_context), jnp.float32) * 0.1

    fn = jax.jit(classical_model_pallas)
    out = fn(x, w_in, w1, b1, w2, b2, w_out)
    out = jax.block_until_ready(out)

    ref = classical_model_ref(x, w_in, w1, b1, w2, b2, w_out)
    assert out.shape == (batch, out_context)
    assert jnp.allclose(out, ref, atol=1e-4, rtol=1e-4), "mismatch vs JAX reference"

    print("KERNEL_OK")
</pallas_src>

<mosaic_0001>
module attributes {stable_mosaic.version = 11 : i64} {
  func.func @classical_model_kernel(%arg0: i32, %arg1: memref<8x128xf32, #tpu.memory_space<vmem>>, %arg2: memref<128x128xf32, #tpu.memory_space<vmem>>, %arg3: memref<2x128x128xf32, #tpu.memory_space<vmem>>, %arg4: memref<2x1x128xf32, #tpu.memory_space<vmem>>, %arg5: memref<2x128x128xf32, #tpu.memory_space<vmem>>, %arg6: memref<2x1x128xf32, #tpu.memory_space<vmem>>, %arg7: memref<128x128xf32, #tpu.memory_space<vmem>>, %arg8: memref<8x128xf32, #tpu.memory_space<vmem>>) attributes {dimension_semantics = [#tpu.dimension_semantics<parallel>], iteration_bounds = array<i64: 1>, scalar_prefetch = 0 : i64, scratch_operands = 0 : i64, tpu.core_type = #tpu.core_type<tc>, window_params = [{transform_indices = @transform_0, window_bounds = array<i64: 8, 128>}, {pipeline_mode = #tpu.pipeline_mode<synchronous>, transform_indices = @transform_1, window_bounds = array<i64: 128, 128>}, {pipeline_mode = #tpu.pipeline_mode<synchronous>, transform_indices = @transform_2, window_bounds = array<i64: 2, 128, 128>}, {pipeline_mode = #tpu.pipeline_mode<synchronous>, transform_indices = @transform_3, window_bounds = array<i64: 2, 1, 128>}, {pipeline_mode = #tpu.pipeline_mode<synchronous>, transform_indices = @transform_4, window_bounds = array<i64: 2, 128, 128>}, {pipeline_mode = #tpu.pipeline_mode<synchronous>, transform_indices = @transform_5, window_bounds = array<i64: 2, 1, 128>}, {pipeline_mode = #tpu.pipeline_mode<synchronous>, transform_indices = @transform_6, window_bounds = array<i64: 128, 128>}, {transform_indices = @transform_7, window_bounds = array<i64: 8, 128>}]} {
    %c0 = arith.constant 0 : index
    %c0_0 = arith.constant 0 : index
    %0 = vector.load %arg1[%c0, %c0_0] : memref<8x128xf32, #tpu.memory_space<vmem>>, vector<8x128xf32>
    %c0_1 = arith.constant 0 : index
    %c0_2 = arith.constant 0 : index
    %1 = vector.load %arg2[%c0_1, %c0_2] : memref<128x128xf32, #tpu.memory_space<vmem>>, vector<128x128xf32>
    %cst = arith.constant dense<0.000000e+00> : vector<8x128xf32>
    %2 = tpu.matmul %0, %1, %cst {dimension_numbers = #tpu.dot_dimension_numbers<[1], [0], [0], [1], [0, 0, 1, 1], [], []>} : vector<8x128xf32>, vector<128x128xf32>, vector<8x128xf32> -> vector<8x128xf32>
    %c0_3 = arith.constant 0 : index
    %c0_4 = arith.constant 0 : index
    %c0_5 = arith.constant 0 : index
    %3 = vector.load %arg3[%c0_3, %c0_4, %c0_5] : memref<2x128x128xf32, #tpu.memory_space<vmem>>, vector<1x128x128xf32>
    %4 = vector.shape_cast %3 : vector<1x128x128xf32> to vector<128x128xf32>
    %c0_6 = arith.constant 0 : index
    %c0_7 = arith.constant 0 : index
    %c0_8 = arith.constant 0 : index
    %5 = vector.load %arg4[%c0_6, %c0_7, %c0_8] : memref<2x1x128xf32, #tpu.memory_space<vmem>>, vector<1x1x128xf32>
    %6 = vector.shape_cast %5 : vector<1x1x128xf32> to vector<1x128xf32>
    %c0_9 = arith.constant 0 : index
    %c0_10 = arith.constant 0 : index
    %c0_11 = arith.constant 0 : index
    %7 = vector.load %arg5[%c0_9, %c0_10, %c0_11] : memref<2x128x128xf32, #tpu.memory_space<vmem>>, vector<1x128x128xf32>
    %8 = vector.shape_cast %7 : vector<1x128x128xf32> to vector<128x128xf32>
    %c0_12 = arith.constant 0 : index
    %c0_13 = arith.constant 0 : index
    %c0_14 = arith.constant 0 : index
    %9 = vector.load %arg6[%c0_12, %c0_13, %c0_14] : memref<2x1x128xf32, #tpu.memory_space<vmem>>, vector<1x1x128xf32>
    %10 = vector.shape_cast %9 : vector<1x1x128xf32> to vector<1x128xf32>
    %cst_15 = arith.constant dense<0.000000e+00> : vector<8x128xf32>
    %11 = tpu.matmul %2, %4, %cst_15 {dimension_numbers = #tpu.dot_dimension_numbers<[1], [0], [0], [1], [0, 0, 1, 1], [], []>} : vector<8x128xf32>, vector<128x128xf32>, vector<8x128xf32> -> vector<8x128xf32>
    %12 = vector.broadcast %6 : vector<1x128xf32> to vector<8x128xf32>
    %13 = arith.addf %11, %12 : vector<8x128xf32>
    %cst_16 = arith.constant 0.000000e+00 : f32
    %14 = vector.broadcast %cst_16 : f32 to vector<8x128xf32>
    %15 = arith.maximumf %13, %14 : vector<8x128xf32>
    %cst_17 = arith.constant dense<0.000000e+00> : vector<8x128xf32>
    %16 = tpu.matmul %15, %8, %cst_17 {dimension_numbers = #tpu.dot_dimension_numbers<[1], [0], [0], [1], [0, 0, 1, 1], [], []>} : vector<8x128xf32>, vector<128x128xf32>, vector<8x128xf32> -> vector<8x128xf32>
    %17 = vector.broadcast %10 : vector<1x128xf32> to vector<8x128xf32>
    %18 = arith.addf %16, %17 : vector<8x128xf32>
    %19 = arith.addf %18, %2 : vector<8x128xf32>
    %cst_18 = arith.constant 0.000000e+00 : f32
    %20 = vector.broadcast %cst_18 : f32 to vector<8x128xf32>
    %21 = arith.maximumf %19, %20 : vector<8x128xf32>
    %c1 = arith.constant 1 : index
    %c0_19 = arith.constant 0 : index
    %c0_20 = arith.constant 0 : index
    %22 = vector.load %arg3[%c1, %c0_19, %c0_20] : memref<2x128x128xf32, #tpu.memory_space<vmem>>, vector<1x128x128xf32>
    %23 = vector.shape_cast %22 : vector<1x128x128xf32> to vector<128x128xf32>
    %c1_21 = arith.constant 1 : index
    %c0_22 = arith.constant 0 : index
    %c0_23 = arith.constant 0 : index
    %24 = vector.load %arg4[%c1_21, %c0_22, %c0_23] : memref<2x1x128xf32, #tpu.memory_space<vmem>>, vector<1x1x128xf32>
    %25 = vector.shape_cast %24 : vector<1x1x128xf32> to vector<1x128xf32>
    %c1_24 = arith.constant 1 : index
    %c0_25 = arith.constant 0 : index
    %c0_26 = arith.constant 0 : index
    %26 = vector.load %arg5[%c1_24, %c0_25, %c0_26] : memref<2x128x128xf32, #tpu.memory_space<vmem>>, vector<1x128x128xf32>
    %27 = vector.shape_cast %26 : vector<1x128x128xf32> to vector<128x128xf32>
    %c1_27 = arith.constant 1 : index
    %c0_28 = arith.constant 0 : index
    %c0_29 = arith.constant 0 : index
    %28 = vector.load %arg6[%c1_27, %c0_28, %c0_29] : memref<2x1x128xf32, #tpu.memory_space<vmem>>, vector<1x1x128xf32>
    %29 = vector.shape_cast %28 : vector<1x1x128xf32> to vector<1x128xf32>
    %cst_30 = arith.constant dense<0.000000e+00> : vector<8x128xf32>
    %30 = tpu.matmul %21, %23, %cst_30 {dimension_numbers = #tpu.dot_dimension_numbers<[1], [0], [0], [1], [0, 0, 1, 1], [], []>} : vector<8x128xf32>, vector<128x128xf32>, vector<8x128xf32> -> vector<8x128xf32>
    %31 = vector.broadcast %25 : vector<1x128xf32> to vector<8x128xf32>
    %32 = arith.addf %30, %31 : vector<8x128xf32>
    %cst_31 = arith.constant 0.000000e+00 : f32
    %33 = vector.broadcast %cst_31 : f32 to vector<8x128xf32>
    %34 = arith.maximumf %32, %33 : vector<8x128xf32>
    %cst_32 = arith.constant dense<0.000000e+00> : vector<8x128xf32>
    %35 = tpu.matmul %34, %27, %cst_32 {dimension_numbers = #tpu.dot_dimension_numbers<[1], [0], [0], [1], [0, 0, 1, 1], [], []>} : vector<8x128xf32>, vector<128x128xf32>, vector<8x128xf32> -> vector<8x128xf32>
    %36 = vector.broadcast %29 : vector<1x128xf32> to vector<8x128xf32>
    %37 = arith.addf %35, %36 : vector<8x128xf32>
    %38 = arith.addf %37, %21 : vector<8x128xf32>
    %cst_33 = arith.constant 0.000000e+00 : f32
    %39 = vector.broadcast %cst_33 : f32 to vector<8x128xf32>
    %40 = arith.maximumf %38, %39 : vector<8x128xf32>
    %c0_34 = arith.constant 0 : index
    %c0_35 = arith.constant 0 : index
    %41 = vector.load %arg7[%c0_34, %c0_35] : memref<128x128xf32, #tpu.memory_space<vmem>>, vector<128x128xf32>
    %cst_36 = arith.constant dense<0.000000e+00> : vector<8x128xf32>
    %42 = tpu.matmul %40, %41, %cst_36 {dimension_numbers = #tpu.dot_dimension_numbers<[1], [0], [0], [1], [0, 0, 1, 1], [], []>} : vector<8x128xf32>, vector<128x128xf32>, vector<8x128xf32> -> vector<8x128xf32>
    %c0_37 = arith.constant 0 : index
    %c0_38 = arith.constant 0 : index
    %43 = vector.load %arg8[%c0_37, %c0_38] : memref<8x128xf32, #tpu.memory_space<vmem>>, vector<8x128xf32>
    tpu.vector_store %arg8[%c0_37, %c0_38], %42 {strides = array<i32>} : memref<8x128xf32, #tpu.memory_space<vmem>>, vector<8x128xf32>,
    return
  }
  func.func @transform_0(%arg0: i32) -> (i32, i32) {
    %c0_i32 = arith.constant 0 : i32
    %c0_i32_0 = arith.constant 0 : i32
    return %arg0, %c0_i32 : i32, i32
  }
  func.func @transform_1(%arg0: i32) -> (i32, i32) {
    %c0_i32 = arith.constant 0 : i32
    %c0_i32_0 = arith.constant 0 : i32
    %c0_i32_1 = arith.constant 0 : i32
    return %c0_i32, %c0_i32_0 : i32, i32
  }
  func.func @transform_2(%arg0: i32) -> (i32, i32, i32) {
    %c0_i32 = arith.constant 0 : i32
    %c0_i32_0 = arith.constant 0 : i32
    %c0_i32_1 = arith.constant 0 : i32
    %c0_i32_2 = arith.constant 0 : i32
    return %c0_i32, %c0_i32_0, %c0_i32_1 : i32, i32, i32
  }
  func.func @transform_3(%arg0: i32) -> (i32, i32, i32) {
    %c0_i32 = arith.constant 0 : i32
    %c0_i32_0 = arith.constant 0 : i32
    %c0_i32_1 = arith.constant 0 : i32
    %c0_i32_2 = arith.constant 0 : i32
    return %c0_i32, %c0_i32_0, %c0_i32_1 : i32, i32, i32
  }
  func.func @transform_4(%arg0: i32) -> (i32, i32, i32) {
    %c0_i32 = arith.constant 0 : i32
    %c0_i32_0 = arith.constant 0 : i32
    %c0_i32_1 = arith.constant 0 : i32
    %c0_i32_2 = arith.constant 0 : i32
    return %c0_i32, %c0_i32_0, %c0_i32_1 : i32, i32, i32
  }
  func.func @transform_5(%arg0: i32) -> (i32, i32, i32) {
    %c0_i32 = arith.constant 0 : i32
    %c0_i32_0 = arith.constant 0 : i32
    %c0_i32_1 = arith.constant 0 : i32
    %c0_i32_2 = arith.constant 0 : i32
    return %c0_i32, %c0_i32_0, %c0_i32_1 : i32, i32, i32
  }
  func.func @transform_6(%arg0: i32) -> (i32, i32) {
    %c0_i32 = arith.constant 0 : i32
    %c0_i32_0 = arith.constant 0 : i32
    %c0_i32_1 = arith.constant 0 : i32
    return %c0_i32, %c0_i32_0 : i32, i32
  }
  func.func @transform_7(%arg0: i32) -> (i32, i32) {
    %c0_i32 = arith.constant 0 : i32
    %c0_i32_0 = arith.constant 0 : i32
    return %arg0, %c0_i32 : i32, i32
  }
}

</mosaic_0001>

<bundles_post_ra>
// kernel: classical_model_pallas.1
= control target key start
LH: loop header
LB: loop body
LE: loop exit
PB: predicated region body
PF: predicated region fallthrough
CT: control target
= control target key end

     0   :  { %v972_v1 = vmov 0.0   ;;  %vm973_vm0 = vmmov 0   ;;  %s1440_s0 = inlined_call_operand.vmem [shape: f32[8,128], index: 0, kind: input, shape index: {}]   ;;  %s1441_s1 = inlined_call_operand.vmem [shape: f32[128,128], index: 1, kind: input, shape index: {}]   ;;  %s1442_s2 = inlined_call_operand.vmem [shape: f32[2,128,128], index: 2, kind: input, shape index: {}]   ;;  %s1443_s3 = inlined_call_operand.vmem [shape: f32[2,1,128], index: 3, kind: input, shape index: {}]   ;;  %s1444_s4 = inlined_call_operand.vmem [shape: f32[2,128,128], index: 4, kind: input, shape index: {}]   ;;  %s1445_s5 = inlined_call_operand.vmem [shape: f32[2,1,128], index: 5, kind: input, shape index: {}]   ;;  %s1446_s6 = inlined_call_operand.vmem [shape: f32[128,128], index: 6, kind: input, shape index: {}]   ;;  %s1447_s7 = inlined_call_operand.hbm [shape: f32[8,128], index: 7, kind: output, shape index: {}]  }
   0x1   :  { %v43_v0 = vld [vmem:[%s1441_s1 + $0x78] sm:$0xff]  ;;  %737 = vmatprep.subr.mxu0 %v972_v1  ;;  %v42_v2 = vld [vmem:[%s1441_s1 + $0x70] sm:$0xff]  ;;  %769 = vmatprep.mubr.msk.f32.mxu0 %vm973_vm0, %v972_v1  ;;  %v41_v3 = vld [vmem:[%s1441_s1 + $0x68] sm:$0xff] }
   0x2   :  { %738 = vmatpush3.msra.mxu0 %v43_v0  ;;  %772 = vmatprep.subr.mxu1 %v972_v1  ;;  %v40_v4 = vld [vmem:[%s1441_s1 + $0x60] sm:$0xff]  ;;  %v129_v5 = vld [vmem:[%s1442_s2 + $0x78] sm:$0xff]  ;;  %v128_v6 = vld [vmem:[%s1442_s2 + $0x70] sm:$0xff] }
   0x3   :  { %739 = vmatprep.subr.mxu0 %v972_v1  ;;  %804 = vmatprep.mubr.msk.f32.mxu1 %vm973_vm0, %v972_v1  ;;  %v39_v7 = vld [vmem:[%s1441_s1 + $0x58] sm:$0xff]  ;;  %v127_v8 = vld [vmem:[%s1442_s2 + $0x68] sm:$0xff]  ;;  %v38_v9 = vld [vmem:[%s1441_s1 + $0x50] sm:$0xff] }
   0x4   :  { %740 = vmatpush3.msra.mxu0 %v42_v2  ;;  %773 = vmatpush3.msra.mxu1 %v129_v5  ;;  %v126_v10 = vld [vmem:[%s1442_s2 + $0x60] sm:$0xff] }
   0x5   :  { %741 = vmatprep.subr.mxu0 %v972_v1  ;;  %774 = vmatprep.subr.mxu1 %v972_v1 }
   0x6   :  { %742 = vmatpush3.msra.mxu0 %v41_v3  ;;  %775 = vmatpush3.msra.mxu1 %v128_v6 }
   0x7   :  { %743 = vmatprep.subr.mxu0 %v972_v1  ;;  %776 = vmatprep.subr.mxu1 %v972_v1 }
   0x8   :  { %744 = vmatpush3.msra.mxu0 %v40_v4  ;;  %777 = vmatpush3.msra.mxu1 %v127_v8 }
   0x9   :  { %745 = vmatprep.subr.mxu0 %v972_v1 }
   0xa   :  { %746 = vmatpush3.msra.mxu0 %v39_v7 }
   0xb   :  { %12 = vsyncpa [#allocation3], 0  ;;  %747 = vmatprep.subr.mxu0 %v972_v1  ;;  %v37_v11 = vld [vmem:[%s1441_s1 + $0x48] sm:$0xff]  ;;  %778 = vmatprep.subr.mxu1 %v972_v1  ;;  %v125_v12 = vld [vmem:[%s1442_s2 + $0x58] sm:$0xff]  ;;  %s974_s24 = smov [#allocation2]  }
   0xc   :  { %748 = vmatpush3.msra.mxu0 %v38_v9  ;;  %779 = vmatpush3.msra.mxu1 %v126_v10  ;;  %v36_v13 = vld [vmem:[%s1441_s1 + $0x40] sm:$0xff]  ;;  %v124_v14 = vld [vmem:[%s1442_s2 + $0x50] sm:$0xff]  ;;  %v35_v15 = vld [vmem:[%s1441_s1 + $0x38] sm:$0xff]  ;;  %s589_s25 = sshll.u32 %s974_s24, 4  ;;  %s590_s25 = int_to_ptr.vmem [resolvable:$true] %s589_s25 }
   0xd   :  { %749 = vmatprep.subr.mxu0 %v972_v1  ;;  %780 = vmatprep.subr.mxu1 %v972_v1  ;;  %v123_v16 = vld [vmem:[%s1442_s2 + $0x48] sm:$0xff]  ;;  %v34_v17 = vld [vmem:[%s1441_s1 + $0x30] sm:$0xff]  ;;  %v122_v18 = vld [vmem:[%s1442_s2 + $0x40] sm:$0xff]  ;;  %p955_p1 = scmp.lt.s32.totalorder %s590_s25, %s590_s25 }
   0xe   :  { %750 = vmatpush3.msra.mxu0 %v37_v11  ;;  %781 = vmatpush3.msra.mxu1 %v125_v12  ;;  %v33_v19 = vld [vmem:[%s1441_s1 + $0x28] sm:$0xff]  ;;  %v121_v20 = vld [vmem:[%s1442_s2 + $0x38] sm:$0xff]  ;;  %v32_v21 = vld [vmem:[%s1441_s1 + $0x20] sm:$0xff] }
   0xf   :  { %751 = vmatprep.subr.mxu0 %v972_v1  ;;  %782 = vmatprep.subr.mxu1 %v972_v1  ;;  %v120_v22 = vld [vmem:[%s1442_s2 + $0x30] sm:$0xff]  ;;  %v31_v23 = vld [vmem:[%s1441_s1 + $0x18] sm:$0xff]  ;;  %v119_v24 = vld [vmem:[%s1442_s2 + $0x28] sm:$0xff] }
  0x10   :  { %752 = vmatpush3.msra.mxu0 %v36_v13  ;;  %783 = vmatpush3.msra.mxu1 %v124_v14  ;;  %v30_v25 = vld [vmem:[%s1441_s1 + $0x10] sm:$0xff]  ;;  %v118_v26 = vld [vmem:[%s1442_s2 + $0x20] sm:$0xff]  ;;  %v29_v27 = vld [vmem:[%s1441_s1 + $0x8] sm:$0xff] }
  0x11   :  { %753 = vmatprep.subr.mxu0 %v972_v1  ;;  %784 = vmatprep.subr.mxu1 %v972_v1  ;;  %v117_v28 = vld [vmem:[%s1442_s2 + $0x18] sm:$0xff]  ;;  %v28_v29 = vld [vmem:[%s1441_s1] sm:$0xff]  ;;  %v116_v30 = vld [vmem:[%s1442_s2 + $0x10] sm:$0xff] }
  0x12   :  { %754 = vmatpush3.msra.mxu0 %v35_v15  ;;  %785 = vmatpush3.msra.mxu1 %v123_v16  ;;  %v27_v31 = vld [vmem:[%s1440_s0] sm:$0xff]  ;;  %v115_v32 = vld [vmem:[%s1442_s2 + $0x8] sm:$0xff]  ;;  %v146_v34 = vld [vmem:[%s1444_s4 + $0x78] sm:$0xff] }
  0x13   :  { %755 = vmatprep.subr.mxu0 %v972_v1  ;;  %786 = vmatprep.subr.mxu1 %v972_v1  ;;  %v114_v33 = vld [vmem:[%s1442_s2] sm:$0xff]  ;;  %v145_v35 = vld [vmem:[%s1444_s4 + $0x70] sm:$0xff]  ;;  %v144_v36 = vld [vmem:[%s1444_s4 + $0x68] sm:$0xff] }
  0x14   :  { %756 = vmatpush3.msra.mxu0 %v34_v17  ;;  %787 = vmatpush3.msra.mxu1 %v122_v18  ;;  %v143_v37 = vld [vmem:[%s1444_s4 + $0x60] sm:$0xff]  ;;  %v142_v38 = vld [vmem:[%s1444_s4 + $0x58] sm:$0xff]  ;;  %v141_v39 = vld [vmem:[%s1444_s4 + $0x50] sm:$0xff] }
  0x15   :  { %757 = vmatprep.subr.mxu0 %v972_v1  ;;  %788 = vmatprep.subr.mxu1 %v972_v1  ;;  %v140_v40 = vld [vmem:[%s1444_s4 + $0x48] sm:$0xff]  ;;  %v139_v41 = vld [vmem:[%s1444_s4 + $0x40] sm:$0xff]  ;;  %v138_v42 = vld [vmem:[%s1444_s4 + $0x38] sm:$0xff] }
  0x16   :  { %758 = vmatpush3.msra.mxu0 %v33_v19  ;;  %789 = vmatpush3.msra.mxu1 %v121_v20  ;;  %v137_v43 = vld [vmem:[%s1444_s4 + $0x30] sm:$0xff]  ;;  %v136_v44 = vld [vmem:[%s1444_s4 + $0x28] sm:$0xff]  ;;  %v135_v45 = vld [vmem:[%s1444_s4 + $0x20] sm:$0xff] }
  0x17   :  { %759 = vmatprep.subr.mxu0 %v972_v1  ;;  %790 = vmatprep.subr.mxu1 %v972_v1  ;;  %v134_v46 = vld [vmem:[%s1444_s4 + $0x18] sm:$0xff]  ;;  %v133_v49 = vld [vmem:[%s1444_s4 + $0x10] sm:$0xff]  ;;  %v132_v50 = vld [vmem:[%s1444_s4 + $0x8] sm:$0xff] }
  0x18   :  { %760 = vmatpush3.msra.mxu0 %v32_v21  ;;  %791 = vmatpush3.msra.mxu1 %v120_v22  ;;  %v131_v51 = vld [vmem:[%s1444_s4] sm:$0xff]  ;;  %v614_v52 = vld [vmem:[%s1442_s2 + $0xf8] sm:$0xff]  ;;  %v613_v53 = vld [vmem:[%s1442_s2 + $0xf0] sm:$0xff] }
  0x19   :  { %761 = vmatprep.subr.mxu0 %v972_v1  ;;  %792 = vmatprep.subr.mxu1 %v972_v1  ;;  %v612_v54 = vld [vmem:[%s1442_s2 + $0xe8] sm:$0xff]  ;;  %v611_v55 = vld [vmem:[%s1442_s2 + $0xe0] sm:$0xff]  ;;  %v610_v56 = vld [vmem:[%s1442_s2 + $0xd8] sm:$0xff] }
  0x1a   :  { %762 = vmatpush3.msra.mxu0 %v31_v23  ;;  %793 = vmatpush3.msra.mxu1 %v119_v24  ;;  %v609_v57 = vld [vmem:[%s1442_s2 + $0xd0] sm:$0xff]  ;;  %v608_v58 = vld [vmem:[%s1442_s2 + $0xc8] sm:$0xff]  ;;  %v607_v59 = vld [vmem:[%s1442_s2 + $0xc0] sm:$0xff] }
  0x1b   :  { %763 = vmatprep.subr.mxu0 %v972_v1  ;;  %794 = vmatprep.subr.mxu1 %v972_v1  ;;  %v606_v60 = vld [vmem:[%s1442_s2 + $0xb8] sm:$0xff]  ;;  %v605_v61 = vld [vmem:[%s1442_s2 + $0xb0] sm:$0xff]  ;;  %v604_v62 = vld [vmem:[%s1442_s2 + $0xa8] sm:$0xff] }
  0x1c   :  { %764 = vmatpush3.msra.mxu0 %v30_v25  ;;  %795 = vmatpush3.msra.mxu1 %v118_v26  ;;  %v603_v63 = vld [vmem:[%s1442_s2 + $0xa0] sm:$0xff]  ;;  %v602_v6 = vld [vmem:[%s1442_s2 + $0x98] sm:$0xff]  ;;  %v601_v7 = vld [vmem:[%s1442_s2 + $0x90] sm:$0xff] }
  0x1d   :  { %765 = vmatprep.subr.mxu0 %v972_v1  ;;  %796 = vmatprep.subr.mxu1 %v972_v1  ;;  %v597_v0 = vld [vmem:[%s1443_s3] ss:$0 sm:$0xff]  ;;  %v600_v8 = vld [vmem:[%s1442_s2 + $0x88] sm:$0xff]  ;;  %v631_v10 = vld [vmem:[%s1444_s4 + $0xf8] sm:$0xff] }
  0x1e   :  { %766 = vmatpush3.msra.mxu0 %v29_v27  ;;  %797 = vmatpush3.msra.mxu1 %v117_v28  ;;  %v599_v9 = vld [vmem:[%s1442_s2 + $0x80] sm:$0xff]  ;;  %v630_v11 = vld [vmem:[%s1444_s4 + $0xf0] sm:$0xff]  ;;  %v629_v12 = vld [vmem:[%s1444_s4 + $0xe8] sm:$0xff] }
  0x1f   :  { %767 = vmatprep.subr.mxu0 %v972_v1  ;;  %798 = vmatprep.subr.mxu1 %v972_v1  ;;  %v628_v13 = vld [vmem:[%s1444_s4 + $0xe0] sm:$0xff]  ;;  %v627_v14 = vld [vmem:[%s1444_s4 + $0xd8] sm:$0xff]  ;;  %v626_v15 = vld [vmem:[%s1444_s4 + $0xd0] sm:$0xff] }
  0x20   :  { %768 = vmatpush3.msra.mxu0 %v28_v29  ;;  %799 = vmatpush3.msra.mxu1 %v116_v30  ;;  %v625_v16 = vld [vmem:[%s1444_s4 + $0xc8] sm:$0xff]  ;;  %v624_v17 = vld [vmem:[%s1444_s4 + $0xc0] sm:$0xff]  ;;  %v623_v18 = vld [vmem:[%s1444_s4 + $0xb8] sm:$0xff] }
  0x21   :  { %770 = vmatmul.mubr.f32.vlgmr.msra.gmra.mxu0 %v27_v31  ;;  %800 = vmatprep.subr.mxu1 %v972_v1  ;;  %v622_v19 = vld [vmem:[%s1444_s4 + $0xb0] sm:$0xff]  ;;  %v621_v20 = vld [vmem:[%s1444_s4 + $0xa8] sm:$0xff]  ;;  %v620_v21 = vld [vmem:[%s1444_s4 + $0xa0] sm:$0xff] }
  0x22   :  { %801 = vmatpush3.msra.mxu1 %v115_v32  ;;  %807 = vmatprep.subr.mxu0 %v972_v1  ;;  %v619_v22 = vld [vmem:[%s1444_s4 + $0x98] sm:$0xff]  ;;  %v598_v23 = vld [vmem:[%s1445_s5] ss:$0 sm:$0xff]  ;;  %v618_v29 = vld [vmem:[%s1444_s4 + $0x90] sm:$0xff] }
  0x23   :  { %802 = vmatprep.subr.mxu1 %v972_v1  ;;  %839 = vmatprep.mubr.msk.f32.mxu0 %vm973_vm0, %v972_v1  ;;  %v617_v30 = vld [vmem:[%s1444_s4 + $0x88] sm:$0xff]  ;;  %v616_v31 = vld [vmem:[%s1444_s4 + $0x80] sm:$0xff]  ;;  %v511_v32 = vld [vmem:[%s1446_s6 + $0x78] sm:$0xff] }
  0x24   :  { %803 = vmatpush3.msra.mxu1 %v114_v33  ;;  %808 = vmatpush3.msra.mxu0 %v146_v34  ;;  %v510_v33 = vld [vmem:[%s1446_s6 + $0x70] sm:$0xff]  ;;  %v509_v34 = vld [vmem:[%s1446_s6 + $0x68] sm:$0xff] }
  0x25   :  { %842 = vmatprep.subr.mxu1 %v972_v1  ;;  %809 = vmatprep.subr.mxu0 %v972_v1 }
  0x26   :  { %810 = vmatpush3.msra.mxu0 %v145_v35  ;;  %v508_v35 = vld [vmem:[%s1446_s6 + $0x60] sm:$0xff] }
  0x27   :  { %811 = vmatprep.subr.mxu0 %v972_v1 }
  0x28   :  { %812 = vmatpush3.msra.mxu0 %v144_v36  ;;  %v507_v36 = vld [vmem:[%s1446_s6 + $0x58] sm:$0xff] }
  0x29   :  { %813 = vmatprep.subr.mxu0 %v972_v1 }
  0x2a   :  { %814 = vmatpush3.msra.mxu0 %v143_v37  ;;  %v506_v37 = vld [vmem:[%s1446_s6 + $0x50] sm:$0xff] }
  0x2b   :  { %815 = vmatprep.subr.mxu0 %v972_v1 }
  0x2c   :  { %816 = vmatpush3.msra.mxu0 %v142_v38  ;;  %v505_v38 = vld [vmem:[%s1446_s6 + $0x48] sm:$0xff] }
  0x2d   :  { %817 = vmatprep.subr.mxu0 %v972_v1 }
  0x2e   :  { %818 = vmatpush3.msra.mxu0 %v141_v39  ;;  %v504_v39 = vld [vmem:[%s1446_s6 + $0x40] sm:$0xff] }
  0x2f   :  { %819 = vmatprep.subr.mxu0 %v972_v1 }
  0x30   :  { %820 = vmatpush3.msra.mxu0 %v140_v40  ;;  %v503_v40 = vld [vmem:[%s1446_s6 + $0x38] sm:$0xff] }
  0x31   :  { %821 = vmatprep.subr.mxu0 %v972_v1 }
  0x32   :  { %822 = vmatpush3.msra.mxu0 %v139_v41  ;;  %v502_v41 = vld [vmem:[%s1446_s6 + $0x30] sm:$0xff] }
  0x33   :  { %823 = vmatprep.subr.mxu0 %v972_v1 }
  0x34   :  { %824 = vmatpush3.msra.mxu0 %v138_v42  ;;  %v501_v42 = vld [vmem:[%s1446_s6 + $0x28] sm:$0xff] }
  0x35   :  { %825 = vmatprep.subr.mxu0 %v972_v1 }
  0x36   :  { %826 = vmatpush3.msra.mxu0 %v137_v43  ;;  %v500_v43 = vld [vmem:[%s1446_s6 + $0x20] sm:$0xff] }
  0x37   :  { %827 = vmatprep.subr.mxu0 %v972_v1 }
  0x38   :  { %828 = vmatpush3.msra.mxu0 %v136_v44  ;;  %v633_v44 = vld [vmem:[%s1443_s3 + $0x1] ss:$0 sm:$0xff] }
  0x39   :  { %829 = vmatprep.subr.mxu0 %v972_v1 }
  0x3a   :  { %830 = vmatpush3.msra.mxu0 %v135_v45 }
  0x3b   :  { %831 = vmatprep.subr.mxu0 %v972_v1 }
  0x3c   :  { %832 = vmatpush3.msra.mxu0 %v134_v46 }
  0x3d   :  { %833 = vmatprep.subr.mxu0 %v972_v1 }
  0x3e   :  { %834 = vmatpush3.msra.mxu0 %v133_v49  ;;  %v499_v49 = vld [vmem:[%s1446_s6 + $0x18] sm:$0xff] }
  0x3f   :  { %835 = vmatprep.subr.mxu0 %v972_v1 }
  0x40   :  { %836 = vmatpush3.msra.mxu0 %v132_v50  ;;  %v498_v50 = vld [vmem:[%s1446_s6 + $0x10] sm:$0xff] }
  0x41   :  { %837 = vmatprep.subr.mxu0 %v972_v1 }
  0x42   :  { %838 = vmatpush3.msra.mxu0 %v131_v51  ;;  %v497_v51 = vld [vmem:[%s1446_s6 + $0x8] sm:$0xff] }
  0x43   :  { %877 = vmatprep.subr.mxu0 %v972_v1 }
  0xe1   :  { %v1206_v47 = vpop.f32.mrf.mxu0 }
  0xe2   :  { %805 = vmatmul.mubr.f32.vlgmr.msra.gmra.mxu1 %v1206_v47 }
  0xe3   :  { %v771_v48 = vpop.f32.mrf.mxu0  ;;  %874 = vmatprep.mubr.msk.f32.mxu1 %vm973_vm0, %v972_v1  ;;  %843 = vmatpush3.msra.mxu1 %v614_v52  ;;  %v496_v52 = vld [vmem:[%s1446_s6] sm:$0xff]  ;;  %s950_s6 = scalar_lea.vmem %s590_s25, 128 }
  0xe4   :  { %844 = vmatprep.subr.mxu1 %v972_v1  ;;  %p951_p0 = scmp.ne.s32.totalorder %s590_s25, %s950_s6  ;;  %p956_p2 = scmp.lt.s32.totalorder %s950_s6, %s950_s6 }
  0xe5   :  { %845 = vmatpush3.msra.mxu1 %v613_v53  ;;  %v634_v53 = vld [vmem:[%s1445_s5 + $0x1] ss:$0 sm:$0xff] }
  0xe6   :  { %846 = vmatprep.subr.mxu1 %v972_v1  ;;  %p957_p3 = por %p956_p2, %p955_p1 }
  0xe7   :  { %847 = vmatpush3.msra.mxu1 %v612_v54 }
  0xe8   :  { %848 = vmatprep.subr.mxu1 %v972_v1  ;;  %p958_p4 = pnand %p957_p3, %p951_p0 }
  0xe9   :  { %849 = vmatpush3.msra.mxu1 %v611_v55 }
  0xea   :  { %850 = vmatprep.subr.mxu1 %v972_v1 }
  0xeb   :  { %851 = vmatpush3.msra.mxu1 %v610_v56 }
  0xec   :  { %852 = vmatprep.subr.mxu1 %v972_v1 }
  0xed   :  { %853 = vmatpush3.msra.mxu1 %v609_v57 }
  0xee   :  { %854 = vmatprep.subr.mxu1 %v972_v1 }
  0xef   :  { %855 = vmatpush3.msra.mxu1 %v608_v58 }
  0xf0   :  { %856 = vmatprep.subr.mxu1 %v972_v1 }
  0xf1   :  { %857 = vmatpush3.msra.mxu1 %v607_v59 }
  0xf2   :  { %858 = vmatprep.subr.mxu1 %v972_v1 }
  0xf3   :  { %859 = vmatpush3.msra.mxu1 %v606_v60 }
  0xf4   :  { %860 = vmatprep.subr.mxu1 %v972_v1 }
  0xf5   :  { %861 = vmatpush3.msra.mxu1 %v605_v61 }
  0xf6   :  { %862 = vmatprep.subr.mxu1 %v972_v1 }
  0xf7   :  { %863 = vmatpush3.msra.mxu1 %v604_v62 }
  0xf8   :  { %864 = vmatprep.subr.mxu1 %v972_v1 }
  0xf9   :  { %865 = vmatpush3.msra.mxu1 %v603_v63 }
  0xfa   :  { %866 = vmatprep.subr.mxu1 %v972_v1 }
  0xfb   :  { %867 = vmatpush3.msra.mxu1 %v602_v6 }
  0xfc   :  { %868 = vmatprep.subr.mxu1 %v972_v1 }
  0xfd   :  { %869 = vmatpush3.msra.mxu1 %v601_v7 }
  0xfe   :  { %870 = vmatprep.subr.mxu1 %v972_v1 }
  0xff   :  { %871 = vmatpush3.msra.mxu1 %v600_v8 }
 0x100   :  { %872 = vmatprep.subr.mxu1 %v972_v1 }
 0x101   :  { %873 = vmatpush3.msra.mxu1 %v599_v9 }
 0x102   :  { %912 = vmatprep.subr.mxu1 %v972_v1 }
 0x1a2   :  { %v220_v2 = vpop.f32.mrf.mxu1 }
 0x1a3   :  { %v221_v3 = vadd.f32 %v597_v0, %v220_v2 }
 0x1a4   :  { %v806_v4 = vpop.f32.mrf.mxu1 }
 0x1a5   :  { %v224_v5 = vmax.f32 %v221_v3, 0.0 }
 0x1a7   :  { %840 = vmatmul.mubr.f32.vlgmr.msra.gmra.mxu0 %v224_v5 }
 0x1a8   :  { %909 = vmatprep.mubr.msk.f32.mxu0 %vm973_vm0, %v972_v1  ;;  %878 = vmatpush3.msra.mxu0 %v631_v10 }
 0x1a9   :  { %879 = vmatprep.subr.mxu0 %v972_v1 }
 0x1aa   :  { %880 = vmatpush3.msra.mxu0 %v630_v11 }
 0x1ab   :  { %881 = vmatprep.subr.mxu0 %v972_v1 }
 0x1ac   :  { %882 = vmatpush3.msra.mxu0 %v629_v12 }
 0x1ad   :  { %883 = vmatprep.subr.mxu0 %v972_v1 }
 0x1ae   :  { %884 = vmatpush3.msra.mxu0 %v628_v13 }
 0x1af   :  { %885 = vmatprep.subr.mxu0 %v972_v1 }
 0x1b0   :  { %886 = vmatpush3.msra.mxu0 %v627_v14 }
 0x1b1   :  { %887 = vmatprep.subr.mxu0 %v972_v1 }
 0x1b2   :  { %888 = vmatpush3.msra.mxu0 %v626_v15 }
 0x1b3   :  { %889 = vmatprep.subr.mxu0 %v972_v1 }
 0x1b4   :  { %890 = vmatpush3.msra.mxu0 %v625_v16 }
 0x1b5   :  { %891 = vmatprep.subr.mxu0 %v972_v1 }
 0x1b6   :  { %892 = vmatpush3.msra.mxu0 %v624_v17 }
 0x1b7   :  { %893 = vmatprep.subr.mxu0 %v972_v1 }
 0x1b8   :  { %894 = vmatpush3.msra.mxu0 %v623_v18 }
 0x1b9   :  { %895 = vmatprep.subr.mxu0 %v972_v1 }
 0x1ba   :  { %896 = vmatpush3.msra.mxu0 %v622_v19 }
 0x1bb   :  { %897 = vmatprep.subr.mxu0 %v972_v1 }
 0x1bc   :  { %898 = vmatpush3.msra.mxu0 %v621_v20 }
 0x1bd   :  { %899 = vmatprep.subr.mxu0 %v972_v1 }
 0x1be   :  { %900 = vmatpush3.msra.mxu0 %v620_v21 }
 0x1bf   :  { %901 = vmatprep.subr.mxu0 %v972_v1 }
 0x1c0   :  { %902 = vmatpush3.msra.mxu0 %v619_v22 }
 0x1c1   :  { %903 = vmatprep.subr.mxu0 %v972_v1 }
 0x1c2   :  { %904 = vmatpush3.msra.mxu0 %v618_v29 }
 0x1c3   :  { %905 = vmatprep.subr.mxu0 %v972_v1 }
 0x1c4   :  { %906 = vmatpush3.msra.mxu0 %v617_v30 }
 0x1c5   :  { %907 = vmatprep.subr.mxu0 %v972_v1 }
 0x1c6   :  { %908 = vmatpush3.msra.mxu0 %v616_v31 }
 0x267   :  { %v297_v24 = vpop.f32.mrf.mxu0 }
 0x268   :  { %v298_v25 = vadd.f32 %v598_v23, %v297_v24 }
 0x269   :  { %v841_v26 = vpop.f32.mrf.mxu0 }
 0x26a   :  { %v1348_v27 = vadd.f32 %v298_v25, %v1206_v47 }
 0x26c   :  { %v302_v28 = vmax.f32 %v1348_v27, 0.0 }
 0x26e   :  { %875 = vmatmul.mubr.f32.vlgmr.msra.gmra.mxu1 %v302_v28 }
 0x26f   :  { %944 = vmatprep.mubr.msk.f32.mxu1 %vm973_vm0, %v972_v1  ;;  %913 = vmatpush3.msra.mxu1 %v511_v32 }
 0x270   :  { %914 = vmatprep.subr.mxu1 %v972_v1 }
 0x271   :  { %915 = vmatpush3.msra.mxu1 %v510_v33 }
 0x272   :  { %916 = vmatprep.subr.mxu1 %v972_v1 }
 0x273   :  { %917 = vmatpush3.msra.mxu1 %v509_v34 }
 0x274   :  { %918 = vmatprep.subr.mxu1 %v972_v1 }
 0x275   :  { %919 = vmatpush3.msra.mxu1 %v508_v35 }
 0x276   :  { %920 = vmatprep.subr.mxu1 %v972_v1 }
 0x277   :  { %921 = vmatpush3.msra.mxu1 %v507_v36 }
 0x278   :  { %922 = vmatprep.subr.mxu1 %v972_v1 }
 0x279   :  { %923 = vmatpush3.msra.mxu1 %v506_v37 }
 0x27a   :  { %924 = vmatprep.subr.mxu1 %v972_v1 }
 0x27b   :  { %925 = vmatpush3.msra.mxu1 %v505_v38 }
 0x27c   :  { %926 = vmatprep.subr.mxu1 %v972_v1 }
 0x27d   :  { %927 = vmatpush3.msra.mxu1 %v504_v39 }
 0x27e   :  { %928 = vmatprep.subr.mxu1 %v972_v1 }
 0x27f   :  { %929 = vmatpush3.msra.mxu1 %v503_v40 }
 0x280   :  { %930 = vmatprep.subr.mxu1 %v972_v1 }
 0x281   :  { %931 = vmatpush3.msra.mxu1 %v502_v41 }
 0x282   :  { %932 = vmatprep.subr.mxu1 %v972_v1 }
 0x283   :  { %933 = vmatpush3.msra.mxu1 %v501_v42 }
 0x284   :  { %934 = vmatprep.subr.mxu1 %v972_v1 }
 0x285   :  { %935 = vmatpush3.msra.mxu1 %v500_v43 }
 0x286   :  { %936 = vmatprep.subr.mxu1 %v972_v1 }
 0x287   :  { %937 = vmatpush3.msra.mxu1 %v499_v49 }
 0x288   :  { %938 = vmatprep.subr.mxu1 %v972_v1 }
 0x289   :  { %939 = vmatpush3.msra.mxu1 %v498_v50 }
 0x28a   :  { %940 = vmatprep.subr.mxu1 %v972_v1 }
 0x28b   :  { %941 = vmatpush3.msra.mxu1 %v497_v51 }
 0x28c   :  { %942 = vmatprep.subr.mxu1 %v972_v1 }
 0x28d   :  { %943 = vmatpush3.msra.mxu1 %v496_v52 }
 0x32e   :  { %v413_v45 = vpop.f32.mrf.mxu1 }
 0x32f   :  { %v414_v46 = vadd.f32 %v633_v44, %v413_v45 }
 0x330   :  { %v876_v47 = vpop.f32.mrf.mxu1 }
 0x331   :  { %v417_v48 = vmax.f32 %v414_v46, 0.0 }
 0x333   :  { %910 = vmatmul.mubr.f32.vlgmr.msra.gmra.mxu0 %v417_v48 }
 0x3f3   :  { %v490_v54 = vpop.f32.mrf.mxu0 }
 0x3f4   :  { %v491_v55 = vadd.f32 %v634_v53, %v490_v54 }
 0x3f5   :  { %v911_v56 = vpop.f32.mrf.mxu0 }
 0x3f6   :  { %v494_v57 = vadd.f32 %v491_v55, %v302_v28 }
 0x3f8   :  { %v495_v58 = vmax.f32 %v494_v57, 0.0 }
 0x3fa   :  { %945 = vmatmul.mubr.f32.vlgmr.msra.gmra.mxu1 %v495_v58 }
 0x4ba   :  { %v578_v1 = vpop.f32.mrf.mxu1 }
 0x4bb   :  { %582 = vst [vmem:[#allocation2] sm:$0xff] %v578_v1 }
 0x4bc   :  { %v946_v59 = vpop.f32.mrf.mxu1 }
 0x4bd   :  { %961 = shalt.err (!%p958_p4)
}
 0x4be   :  { %592 = dma.vmem_to_hbm [thread:$0]  %s590_s25, 128, %s1447_s7, [#allocation3]  }
 0x4bf   :  { %970 = dma.done.wait [#allocation3], 128  }
 0x4c0   :  { %971 = vsyncadd [#allocation3], 4294967168 }
 0x4c1   :  { %596 = vsyncpa [#allocation3], 1 }

</bundles_post_ra>
